<compile_context>
chip_gen: v5e
topology: v5e:2x2
jax: 0.10.0
libtpu: 0.0.40
codegen_flags: <defaults>
</compile_context>

<pallas_src>
import functools

import jax
import jax.numpy as jnp
from jax.experimental import pallas as pl
from jax.experimental.pallas import tpu as pltpu

LANES = 128            # vreg lane width
SUBLANE = 8            # f32 sublane tile
ROW_ALIGN = 32         # tm granularity in the tiled path (covers f32/bf16/int8/bool packing)
MAX_TM = 8192          # rows/tile: 8192*128*4B = 4 MiB per f32 input tile (24 MiB double-buffered)
SPLIT_ROWS = 2 * ROW_ALIGN  # above this many rows, always emit >=2 blocks (v7x dual-TC sharding)
# 24 MiB f32 double-buffered working set + headroom; raises v5e's 16 MiB default scoped
# VMEM and stays <= v7x's 64 MiB physical VMEM.
_VMEM_LIMIT_BYTES = 40 * 1024 * 1024


def _round_up(a, b):
    return ((a + b - 1) // b) * b


def _to_f32(x):
    # bool -> {0.0, 1.0}; bf16/int widened on the VPU (in-kernel) or fused (wrapper tail).
    if x.dtype == jnp.bool_:
        return jnp.where(x, jnp.float32(1.0), jnp.float32(0.0))
    return x.astype(jnp.float32)


def _masked_mse_kernel(x_ref, t_ref, m_ref, num_ref, den_ref, *, tm, valid_rows, ragged):
    x = _to_f32(x_ref[...])
    t = _to_f32(t_ref[...])
    m = _to_f32(m_ref[...])
    diff = x - t
    sq = diff * diff

    def emit(num_elems, den_elems):
        # Fold the (tm, 128) tile to one (8, 128) f32 partial: splitting the sublane
        # axis at a multiple of 8 is a layout no-op and the axis-0 sum is pure VPU
        # vreg adds (no per-step cross-lane XLU reduce).
        num_ref[0] = jnp.sum(num_elems.reshape(tm // SUBLANE, SUBLANE, LANES), axis=0)
        den_ref[0] = jnp.sum(den_elems.reshape(tm // SUBLANE, SUBLANE, LANES), axis=0)

    if not ragged:
        emit(sq * m, m)
    else:
        i = pl.program_id(0)
        last = pl.num_programs(0) - 1

        @pl.when(i != last)
        def _():
            emit(sq * m, m)

        # The last block hangs past the end of the array: those rows hold unspecified
        # data (possibly NaN/Inf) and MUST be excluded from BOTH sums.  jnp.where is a
        # select, so non-finite garbage in sq/m is discarded, not multiplied.
        @pl.when(i == last)
        def _():
            valid = valid_rows - i * tm
            row = jax.lax.broadcasted_iota(jnp.int32, (tm, LANES), 0)
            keep = row < valid
            emit(jnp.where(keep, sq * m, 0.0), jnp.where(keep, m, 0.0))


@jax.jit
def masked_mse_loss(inp, target, mask):
    """Pallas TPU implementation of MaskedMSELoss.forward. Returns a scalar f32 loss."""
    assert inp.shape == target.shape == mask.shape
    n = inp.size

    x = inp.reshape(-1)
    t = target.reshape(-1)
    m = mask.reshape(-1)

    rows = n // LANES
    rem = n - rows * LANES

    # Flat <128-element remainder: tiny jnp expression in the wrapper.
    if rem:
        xt, tt, mt = (_to_f32(a[rows * LANES:]) for a in (x, t, m))
        tail_num = jnp.sum((xt - tt) ** 2 * mt)
        tail_den = jnp.sum(mt)
    else:
        tail_num = jnp.float32(0.0)
        tail_den = jnp.float32(0.0)

    if rows == 0:
        # Fewer than 128 elements: not worth a kernel launch.
        return tail_num / tail_den

    if rem:
        # Only the ragged-n case pays this prefix slice; the common n % 128 == 0 case
        # below is a free bitcast reshape (no jnp.pad, no extra HBM pass).
        x, t, m = (a[: rows * LANES] for a in (x, t, m))
    x2 = x.reshape(rows, LANES)
    t2 = t.reshape(rows, LANES)
    m2 = m.reshape(rows, LANES)

    # Tile-row count: biggest tile that fits VMEM, tm always a multiple of 8 and never
    # larger than rows (only the LAST block may be ragged -> masked in-kernel).  Once
    # there is enough work we force grid_n >= 2 so the "parallel" axis can shard across
    # both TensorCores on v7x.
    if rows < SPLIT_ROWS and rows % SUBLANE == 0:
        tm = rows                                     # single full-array block
    elif rows < SPLIT_ROWS:
        tm = (rows // SUBLANE) * SUBLANE              # >= 8; small ragged last block
    else:
        tm = min(MAX_TM, _round_up(pl.cdiv(rows, 2), ROW_ALIGN))
    grid_n = pl.cdiv(rows, tm)
    ragged = (rows % tm) != 0

    kernel = functools.partial(_masked_mse_kernel, tm=tm, valid_rows=rows, ragged=ragged)

    in_spec = pl.BlockSpec((tm, LANES), lambda i: (i, 0))
    out_spec = pl.BlockSpec((1, SUBLANE, LANES), lambda i: (i, 0, 0))

    num_p, den_p = pl.pallas_call(
        kernel,
        out_shape=(
            jax.ShapeDtypeStruct((grid_n, SUBLANE, LANES), jnp.float32),
            jax.ShapeDtypeStruct((grid_n, SUBLANE, LANES), jnp.float32),
        ),
        grid_spec=pltpu.PrefetchScalarGridSpec(
            num_scalar_prefetch=0,
            grid=(grid_n,),
            in_specs=[in_spec, in_spec, in_spec],
            out_specs=[out_spec, out_spec],
        ),
        compiler_params=pltpu.CompilerParams(
            # Independent blocks -> shardable across both TCs on v7x.
            dimension_semantics=("parallel",),
            vmem_limit_bytes=_VMEM_LIMIT_BYTES,
        ),
    )(x2, t2, m2)

    num = jnp.sum(num_p) + tail_num
    den = jnp.sum(den_p) + tail_den
    # NOTE: all-zero mask -> NaN/Inf, matching the reference semantics.
    return num / den


if __name__ == "__main__":
    def ref_loss(a, b, m):
        af, bf, mf = (v.astype(jnp.float32) for v in (a, b, m))
        return jnp.sum((af - bf) ** 2 * mf) / jnp.sum(mf)

    # 1) Spec shape: NCHW f32 inputs, f32 {0,1} mask (single-block path).
    k1, k2, k3 = jax.random.split(jax.random.PRNGKey(0), 3)
    shape = (2, 4, 16, 16)
    inp = jax.random.normal(k1, shape, dtype=jnp.float32)
    tgt = jax.random.normal(k2, shape, dtype=jnp.float32)
    msk = (jax.random.uniform(k3, shape) > 0.5).astype(jnp.float32)
    out = jax.block_until_ready(masked_mse_loss(inp, tgt, msk))
    assert jnp.allclose(out, ref_loss(inp, tgt, msk), rtol=1e-4, atol=1e-4), out

    # 2) bf16 inputs + bool mask streamed at narrow dtypes, widened in-kernel.
    inp_bf, tgt_bf, msk_b = inp.astype(jnp.bfloat16), tgt.astype(jnp.bfloat16), msk > 0
    out_bf = jax.block_until_ready(masked_mse_loss(inp_bf, tgt_bf, msk_b))
    assert jnp.allclose(out_bf, ref_loss(inp_bf, tgt_bf, msk_b), rtol=1e-3, atol=1e-3), out_bf

    # 3) Ragged last grid block (rows % tm != 0) -> in-kernel iota mask path.
    k4, k5, k6 = jax.random.split(jax.random.PRNGKey(1), 3)
    shape3 = (1, 1, 72, 128)                  # rows=72 -> tm=64, grid=2, last block has 8 valid rows
    a3 = jax.random.normal(k4, shape3, dtype=jnp.float32)
    b3 = jax.random.normal(k5, shape3, dtype=jnp.float32)
    m3 = (jax.random.uniform(k6, shape3) > 0.3).astype(jnp.float32)
    out3 = jax.block_until_ready(masked_mse_loss(a3, b3, m3))
    assert jnp.allclose(out3, ref_loss(a3, b3, m3), rtol=1e-4, atol=1e-4), out3

    # 4) n not a multiple of 128 -> flat-tail remainder handled in the wrapper.
    k7, k8, k9 = jax.random.split(jax.random.PRNGKey(2), 3)
    shape4 = (2, 4, 9, 18)                    # 1296 elems -> rows=10 (+16 tail elements)
    a4 = jax.random.normal(k7, shape4, dtype=jnp.float32)
    b4 = jax.random.normal(k8, shape4, dtype=jnp.float32)
    m4 = (jax.random.uniform(k9, shape4) > 0.5).astype(jnp.float32)
    out4 = jax.block_until_ready(masked_mse_loss(a4, b4, m4))
    assert jnp.allclose(out4, ref_loss(a4, b4, m4), rtol=1e-4, atol=1e-4), out4

    # 5) Fewer than 128 elements -> pure-jnp fallback path.
    a5 = jax.random.normal(jax.random.PRNGKey(3), (7, 13), dtype=jnp.float32)
    b5 = jnp.zeros((7, 13), jnp.float32)
    m5 = jnp.ones((7, 13), jnp.float32)
    out5 = jax.block_until_ready(masked_mse_loss(a5, b5, m5))
    assert jnp.allclose(out5, ref_loss(a5, b5, m5), rtol=1e-4, atol=1e-4), out5

    print("KERNEL_OK")
</pallas_src>

<mosaic_0001>
module attributes {stable_mosaic.version = 11 : i64} {
  func.func @_masked_mse_kernel(%arg0: i32, %arg1: memref<16x128xf32, #tpu.memory_space<vmem>>, %arg2: memref<16x128xf32, #tpu.memory_space<vmem>>, %arg3: memref<16x128xf32, #tpu.memory_space<vmem>>, %arg4: memref<1x8x128xf32, #tpu.memory_space<vmem>>, %arg5: memref<1x8x128xf32, #tpu.memory_space<vmem>>) attributes {dimension_semantics = [#tpu.dimension_semantics<parallel>], iteration_bounds = array<i64: 1>, scalar_prefetch = 0 : i64, scratch_operands = 0 : i64, tpu.core_type = #tpu.core_type<tc>, window_params = [{transform_indices = @transform_0, window_bounds = array<i64: 16, 128>}, {transform_indices = @transform_1, window_bounds = array<i64: 16, 128>}, {transform_indices = @transform_2, window_bounds = array<i64: 16, 128>}, {transform_indices = @transform_3, window_bounds = array<i64: 1, 8, 128>}, {transform_indices = @transform_4, window_bounds = array<i64: 1, 8, 128>}]} {
    %c0 = arith.constant 0 : index
    %c0_0 = arith.constant 0 : index
    %0 = vector.load %arg1[%c0, %c0_0] : memref<16x128xf32, #tpu.memory_space<vmem>>, vector<16x128xf32>
    %c0_1 = arith.constant 0 : index
    %c0_2 = arith.constant 0 : index
    %1 = vector.load %arg2[%c0_1, %c0_2] : memref<16x128xf32, #tpu.memory_space<vmem>>, vector<16x128xf32>
    %c0_3 = arith.constant 0 : index
    %c0_4 = arith.constant 0 : index
    %2 = vector.load %arg3[%c0_3, %c0_4] : memref<16x128xf32, #tpu.memory_space<vmem>>, vector<16x128xf32>
    %3 = arith.subf %0, %1 : vector<16x128xf32>
    %4 = arith.mulf %3, %3 : vector<16x128xf32>
    %5 = arith.mulf %4, %2 : vector<16x128xf32>
    %6 = vector.shape_cast %5 : vector<16x128xf32> to vector<2x8x128xf32>
    %cst = arith.constant dense<0.000000e+00> : vector<8x128xf32>
    %7 = vector.multi_reduction <add>, %6, %cst [0] : vector<2x8x128xf32> to vector<8x128xf32>
    %c0_5 = arith.constant 0 : index
    %c0_6 = arith.constant 0 : index
    %c0_7 = arith.constant 0 : index
    %8 = vector.load %arg4[%c0_5, %c0_6, %c0_7] : memref<1x8x128xf32, #tpu.memory_space<vmem>>, vector<1x8x128xf32>
    %9 = vector.shape_cast %8 : vector<1x8x128xf32> to vector<8x128xf32>
    %10 = vector.shape_cast %7 : vector<8x128xf32> to vector<1x8x128xf32>
    tpu.vector_store %arg4[%c0_5, %c0_6, %c0_7], %10 {strides = array<i32>} : memref<1x8x128xf32, #tpu.memory_space<vmem>>, vector<1x8x128xf32>,
    %11 = vector.shape_cast %2 : vector<16x128xf32> to vector<2x8x128xf32>
    %cst_8 = arith.constant dense<0.000000e+00> : vector<8x128xf32>
    %12 = vector.multi_reduction <add>, %11, %cst_8 [0] : vector<2x8x128xf32> to vector<8x128xf32>
    %c0_9 = arith.constant 0 : index
    %c0_10 = arith.constant 0 : index
    %c0_11 = arith.constant 0 : index
    %13 = vector.load %arg5[%c0_9, %c0_10, %c0_11] : memref<1x8x128xf32, #tpu.memory_space<vmem>>, vector<1x8x128xf32>
    %14 = vector.shape_cast %13 : vector<1x8x128xf32> to vector<8x128xf32>
    %15 = vector.shape_cast %12 : vector<8x128xf32> to vector<1x8x128xf32>
    tpu.vector_store %arg5[%c0_9, %c0_10, %c0_11], %15 {strides = array<i32>} : memref<1x8x128xf32, #tpu.memory_space<vmem>>, vector<1x8x128xf32>,
    return
  }
  func.func @transform_0(%arg0: i32) -> (i32, i32) {
    %c0_i32 = arith.constant 0 : i32
    %c0_i32_0 = arith.constant 0 : i32
    return %arg0, %c0_i32 : i32, i32
  }
  func.func @transform_1(%arg0: i32) -> (i32, i32) {
    %c0_i32 = arith.constant 0 : i32
    %c0_i32_0 = arith.constant 0 : i32
    return %arg0, %c0_i32 : i32, i32
  }
  func.func @transform_2(%arg0: i32) -> (i32, i32) {
    %c0_i32 = arith.constant 0 : i32
    %c0_i32_0 = arith.constant 0 : i32
    return %arg0, %c0_i32 : i32, i32
  }
  func.func @transform_3(%arg0: i32) -> (i32, i32, i32) {
    %c0_i32 = arith.constant 0 : i32
    %c0_i32_0 = arith.constant 0 : i32
    %c0_i32_1 = arith.constant 0 : i32
    return %arg0, %c0_i32, %c0_i32_0 : i32, i32, i32
  }
  func.func @transform_4(%arg0: i32) -> (i32, i32, i32) {
    %c0_i32 = arith.constant 0 : i32
    %c0_i32_0 = arith.constant 0 : i32
    %c0_i32_1 = arith.constant 0 : i32
    return %arg0, %c0_i32, %c0_i32_0 : i32, i32, i32
  }
}

</mosaic_0001>

<bundles_post_ra>
// kernel: masked_mse_loss.1
= control target key start
LH: loop header
LB: loop body
LE: loop exit
PB: predicated region body
PF: predicated region fallthrough
CT: control target
= control target key end

     0   :  { %s89_s0 = inlined_call_operand.vmem [shape: f32[16,128], index: 0, kind: input, shape index: {}]   ;;  %s90_s1 = inlined_call_operand.vmem [shape: f32[16,128], index: 1, kind: input, shape index: {}]   ;;  %s91_s2 = inlined_call_operand.vmem [shape: f32[16,128], index: 2, kind: input, shape index: {}]   ;;  %s92_s4 = inlined_call_operand.vmem [shape: f32[1,8,128], index: 4, kind: output, shape index: {1}]   ;;  %s93_s3 = inlined_call_operand.vmem [shape: f32[1,8,128], index: 3, kind: output, shape index: {0}]  }
   0x1   :  { %v16_v0 = vld [vmem:[%s89_s0] sm:$0xff]  ;;  %v17_v1 = vld [vmem:[%s89_s0 + $0x8] sm:$0xff] }
   0x2   :  { %v18_v2 = vld [vmem:[%s90_s1] sm:$0xff]  ;;  %v19_v3 = vld [vmem:[%s90_s1 + $0x8] sm:$0xff] }
   0x3   :  { %v20_v4 = vld [vmem:[%s91_s2] sm:$0xff]  ;;  %v21_v5 = vld [vmem:[%s91_s2 + $0x8] sm:$0xff]  ;;  %v22_v6 = vsub.f32 %v16_v0, %v18_v2  ;;  %v23_v7 = vsub.f32 %v17_v1, %v19_v3 }
   0x4   :  { %v30_v8 = vadd.f32 %v21_v5, %v20_v4 }
   0x5   :  { %v24_v9 = vmul.f32 %v22_v6, %v22_v6  ;;  %v25_v10 = vmul.f32 %v23_v7, %v23_v7 }
   0x6   :  { %31 = vst [vmem:[%s92_s4] sm:$0xff] %v30_v8 }
   0x7   :  { %v26_v11 = vmul.f32 %v24_v9, %v20_v4  ;;  %v27_v12 = vmul.f32 %v25_v10, %v21_v5 }
   0x9   :  { %v28_v13 = vadd.f32 %v27_v12, %v26_v11 }
   0xb   :  { %29 = vst [vmem:[%s93_s3] sm:$0xff] %v28_v13 }

</bundles_post_ra>
